<compile_context>
chip_gen: v7x
topology: tpu7x:2x2x1
jax: 0.10.0
libtpu: 0.0.40
codegen_flags: <defaults>
</compile_context>

<pallas_src>
import functools

import jax
import jax.numpy as jnp
from jax.experimental import pallas as pl
from jax.experimental.pallas import tpu as pltpu


def _kl_loss_kernel(pred_ref, label_ref, out_ref, *, batch, masked):
    pred = pred_ref[...].astype(jnp.float32)
    label = label_ref[...].astype(jnp.float32)
    tb, c = pred.shape

    if masked:
        # Only emitted when B % tb != 0: zero the rows of the (padded) last tile
        # that fall past the true batch so they contribute nothing.
        i = pl.program_id(0)
        row_ids = i * tb + jax.lax.broadcasted_iota(jnp.int32, (tb, 1), 0)
        valid = row_ids < batch
        pred = jnp.where(valid, pred, 0.0)
        label = jnp.where(valid, label, 0.0)

    # log_softmax(prediction, axis=-1), numerically stable.
    m1 = jnp.max(pred, axis=-1, keepdims=True)
    s1 = pred - m1
    lse1 = jnp.log(jnp.sum(jnp.exp(s1), axis=-1, keepdims=True))
    log_p = s1 - lse1

    # softmax(label * 10, axis=-1) and its log, sharing the shifted logits so no
    # per-element log(q) is ever taken (EUP work = 2 exps / element).
    l10 = label * 10.0
    m2 = jnp.max(l10, axis=-1, keepdims=True)
    s2 = l10 - m2
    e2 = jnp.exp(s2)
    sum2 = jnp.sum(e2, axis=-1, keepdims=True)
    lse2 = jnp.log(sum2)
    # Exact per-row reciprocal (only tb divides per tile, negligible cost);
    # approx=True would risk the 1e-5 accuracy target for no measurable gain
    # while the kernel stays HBM-bound.
    inv2 = 1.0 / sum2
    q = e2 * inv2                  # probs2
    log_q = s2 - lse2

    # PyTorch KLDivLoss convention: terms with target == 0 contribute exactly 0
    # (q can still underflow to 0 in f32, so keep the gate).
    keep = q > 0.0
    if masked:
        keep = jnp.logical_and(keep, valid)
    elt = jnp.where(keep, q * (log_q - log_p), 0.0)

    # Sublane-only partial reduction -> lane-dense (1, 1, C) per-block partial.
    # The cross-lane sum and the /C happen once, in the JAX wrapper, so there is
    # no loop-carried accumulator and the batch grid can stay "parallel".
    out_ref[...] = jnp.sum(elt, axis=0, keepdims=True)[None, :, :]


def _vmem_limit_bytes():
    cap = None
    try:
        cap = getattr(pltpu.get_tpu_info(), "vmem_capacity_bytes", None)
    except Exception:
        cap = None
    if cap is None:
        cap = 64 * 1024 * 1024          # assume smallest (v7x-like) if unknown
    if cap >= 128 * 1024 * 1024:        # v5e / v6e: 128 MiB physical per TC
        return 96 * 1024 * 1024
    return 48 * 1024 * 1024             # v7x: 64 MiB physical per TC


def kl_loss(prediction, label, *, block_rows=None):
    """prediction, label: (B, C) arrays (f32 or bf16). Returns scalar f32 loss."""
    assert prediction.shape == label.shape and prediction.ndim == 2
    B, C = prediction.shape
    in_itemsize = max(jnp.dtype(prediction.dtype).itemsize,
                      jnp.dtype(label.dtype).itemsize)

    if block_rows is None:
        # Target ~2 MiB of f32 compute footprint per tile (near the measured
        # ~85% HBM-roofline knee), independent of the input dtype.
        tb = max(8, (2 * 1024 * 1024) // max(1, C * 4))
    else:
        tb = block_rows

    # VMEM working-set guard (v7x has only 64 MiB per TC):
    #   2 inputs x 2 pipeline buffers x (tb*C*itemsize)  +  ~6 live f32 temps.
    budget = 40 * 1024 * 1024
    per_row_bytes = C * (4 * in_itemsize + 6 * 4)
    tb = min(tb, max(8, budget // max(1, per_row_bytes)))

    tb = min(tb, B)
    if tb < B:
        tb = max(8, (tb // 8) * 8)      # sublane-aligned unless full-extent
    grid = pl.cdiv(B, tb)
    masked = (B % tb) != 0

    kernel = functools.partial(_kl_loss_kernel, batch=B, masked=masked)
    partials = pl.pallas_call(
        kernel,
        out_shape=jax.ShapeDtypeStruct((grid, 1, C), jnp.float32),
        grid_spec=pltpu.PrefetchScalarGridSpec(
            num_scalar_prefetch=0,
            grid=(grid,),
            # TODO(synk): if small-C / long-grid profiles still show exposed DMA,
            # add pipeline_mode=pl.Buffered(3) to these input specs and sweep 2 vs 3.
            in_specs=[
                pl.BlockSpec((tb, C), lambda i: (i, 0)),
                pl.BlockSpec((tb, C), lambda i: (i, 0)),
            ],
            out_specs=pl.BlockSpec((1, 1, C), lambda i: (i, 0, 0)),
        ),
        compiler_params=pltpu.CompilerParams(
            # Per-block outputs, no carried state -> megacore can shard the
            # batch grid across both TensorCores on v7x.
            dimension_semantics=("parallel",),
            vmem_limit_bytes=_vmem_limit_bytes(),
        ),
    )(prediction, label)

    # mean over all B*C elements, then * batch_size  ==  sum(elt) / C
    return jnp.sum(partials) / jnp.float32(C)


def kl_loss_ref(prediction, label):
    """Pure-JAX reference matching the PyTorch module semantics."""
    B, C = prediction.shape
    log_p = jax.nn.log_softmax(prediction.astype(jnp.float32), axis=1)
    q = jax.nn.softmax(label.astype(jnp.float32) * 10.0, axis=1)
    elt = jnp.where(q > 0.0, q * (jnp.log(q) - log_p), 0.0)
    return jnp.mean(elt) * B


if __name__ == "__main__":
    key = jax.random.PRNGKey(0)
    k1, k2, k3, k4 = jax.random.split(key, 4)

    # Small shapes consistent with the module: (batch, classes).
    B, C = 8, 128
    prediction = jax.random.normal(k1, (B, C), dtype=jnp.float32)
    label = jax.random.normal(k2, (B, C), dtype=jnp.float32)

    loss = kl_loss(prediction, label)
    jax.block_until_ready(loss)
    ref = kl_loss_ref(prediction, label)
    assert jnp.allclose(loss, ref, rtol=1e-5, atol=1e-5), (loss, ref)

    # Multi-tile path with a partial (masked) last tile: B % TB != 0.
    B2, C2 = 20, 128
    prediction2 = jax.random.normal(k3, (B2, C2), dtype=jnp.float32)
    label2 = jax.random.normal(k4, (B2, C2), dtype=jnp.float32)
    loss2 = kl_loss(prediction2, label2, block_rows=8)   # grid = 3, last tile padded
    jax.block_until_ready(loss2)
    ref2 = kl_loss_ref(prediction2, label2)
    assert jnp.allclose(loss2, ref2, rtol=1e-5, atol=1e-5), (loss2, ref2)

    # bf16 input path (kernel upcasts to f32 internally; halves HBM traffic).
    pred_bf16 = prediction2.astype(jnp.bfloat16)
    label_bf16 = label2.astype(jnp.bfloat16)
    loss3 = kl_loss(pred_bf16, label_bf16, block_rows=8)
    jax.block_until_ready(loss3)
    ref3 = kl_loss_ref(pred_bf16, label_bf16)
    assert jnp.allclose(loss3, ref3, rtol=1e-4, atol=1e-4), (loss3, ref3)

    print("KERNEL_OK")
</pallas_src>

<mosaic_0001>
module attributes {stable_mosaic.version = 11 : i64} {
  func.func @_kl_loss_kernel(%arg0: i32, %arg1: memref<8x128xf32, #tpu.memory_space<vmem>>, %arg2: memref<8x128xf32, #tpu.memory_space<vmem>>, %arg3: memref<1x1x128xf32, #tpu.memory_space<vmem>>) attributes {dimension_semantics = [#tpu.dimension_semantics<parallel>], iteration_bounds = array<i64: 1>, scalar_prefetch = 0 : i64, scratch_operands = 0 : i64, tpu.core_type = #tpu.core_type<tc>, window_params = [{transform_indices = @transform_0, window_bounds = array<i64: 8, 128>}, {transform_indices = @transform_1, window_bounds = array<i64: 8, 128>}, {transform_indices = @transform_2, window_bounds = array<i64: 1, 1, 128>}]} {
    %c0 = arith.constant 0 : index
    %c0_0 = arith.constant 0 : index
    %0 = vector.load %arg1[%c0, %c0_0] : memref<8x128xf32, #tpu.memory_space<vmem>>, vector<8x128xf32>
    %c0_1 = arith.constant 0 : index
    %c0_2 = arith.constant 0 : index
    %1 = vector.load %arg2[%c0_1, %c0_2] : memref<8x128xf32, #tpu.memory_space<vmem>>, vector<8x128xf32>
    %cst = arith.constant dense<0xFF800000> : vector<8xf32>
    %2 = vector.multi_reduction <maximumf>, %0, %cst [1] : vector<8x128xf32> to vector<8xf32>
    %3 = vector.shape_cast %2 : vector<8xf32> to vector<8x1xf32>
    %4 = vector.broadcast %3 : vector<8x1xf32> to vector<8x128xf32>
    %5 = arith.subf %0, %4 : vector<8x128xf32>
    %6 = math.exp %5 : vector<8x128xf32>
    %cst_3 = arith.constant dense<0.000000e+00> : vector<8xf32>
    %7 = vector.multi_reduction <add>, %6, %cst_3 [1] : vector<8x128xf32> to vector<8xf32>
    %8 = vector.shape_cast %7 : vector<8xf32> to vector<8x1xf32>
    %9 = math.log %8 : vector<8x1xf32>
    %10 = vector.broadcast %9 : vector<8x1xf32> to vector<8x128xf32>
    %11 = arith.subf %5, %10 : vector<8x128xf32>
    %cst_4 = arith.constant 1.000000e+01 : f32
    %12 = vector.broadcast %cst_4 : f32 to vector<8x128xf32>
    %13 = arith.mulf %1, %12 : vector<8x128xf32>
    %cst_5 = arith.constant dense<0xFF800000> : vector<8xf32>
    %14 = vector.multi_reduction <maximumf>, %13, %cst_5 [1] : vector<8x128xf32> to vector<8xf32>
    %15 = vector.shape_cast %14 : vector<8xf32> to vector<8x1xf32>
    %16 = vector.broadcast %15 : vector<8x1xf32> to vector<8x128xf32>
    %17 = arith.subf %13, %16 : vector<8x128xf32>
    %18 = math.exp %17 : vector<8x128xf32>
    %cst_6 = arith.constant dense<0.000000e+00> : vector<8xf32>
    %19 = vector.multi_reduction <add>, %18, %cst_6 [1] : vector<8x128xf32> to vector<8xf32>
    %20 = vector.shape_cast %19 : vector<8xf32> to vector<8x1xf32>
    %21 = math.log %20 : vector<8x1xf32>
    %cst_7 = arith.constant 1.000000e+00 : f32
    %22 = vector.broadcast %cst_7 : f32 to vector<8x1xf32>
    %23 = arith.divf %22, %20 : vector<8x1xf32>
    %24 = vector.broadcast %23 : vector<8x1xf32> to vector<8x128xf32>
    %25 = arith.mulf %18, %24 : vector<8x128xf32>
    %26 = vector.broadcast %21 : vector<8x1xf32> to vector<8x128xf32>
    %27 = arith.subf %17, %26 : vector<8x128xf32>
    %cst_8 = arith.constant 0.000000e+00 : f32
    %28 = vector.broadcast %cst_8 : f32 to vector<8x128xf32>
    %29 = arith.cmpf ogt, %25, %28 : vector<8x128xf32>
    %30 = arith.subf %27, %11 : vector<8x128xf32>
    %31 = arith.mulf %25, %30 : vector<8x128xf32>
    %cst_9 = arith.constant 0.000000e+00 : f32
    %32 = vector.broadcast %cst_9 : f32 to vector<8x128xf32>
    %33 = arith.select %29, %31, %32 : vector<8x128xi1>, vector<8x128xf32>
    %cst_10 = arith.constant dense<0.000000e+00> : vector<128xf32>
    %34 = vector.multi_reduction <add>, %33, %cst_10 [0] : vector<8x128xf32> to vector<128xf32>
    %35 = vector.shape_cast %34 : vector<128xf32> to vector<1x128xf32>
    %36 = vector.shape_cast %35 : vector<1x128xf32> to vector<1x1x128xf32>
    %c0_11 = arith.constant 0 : index
    %c0_12 = arith.constant 0 : index
    %c0_13 = arith.constant 0 : index
    %37 = vector.load %arg3[%c0_11, %c0_12, %c0_13] : memref<1x1x128xf32, #tpu.memory_space<vmem>>, vector<1x1x128xf32>
    tpu.vector_store %arg3[%c0_11, %c0_12, %c0_13], %36 {strides = array<i32>} : memref<1x1x128xf32, #tpu.memory_space<vmem>>, vector<1x1x128xf32>,
    return
  }
  func.func @transform_0(%arg0: i32) -> (i32, i32) {
    %c0_i32 = arith.constant 0 : i32
    %c0_i32_0 = arith.constant 0 : i32
    return %arg0, %c0_i32 : i32, i32
  }
  func.func @transform_1(%arg0: i32) -> (i32, i32) {
    %c0_i32 = arith.constant 0 : i32
    %c0_i32_0 = arith.constant 0 : i32
    return %arg0, %c0_i32 : i32, i32
  }
  func.func @transform_2(%arg0: i32) -> (i32, i32, i32) {
    %c0_i32 = arith.constant 0 : i32
    %c0_i32_0 = arith.constant 0 : i32
    %c0_i32_1 = arith.constant 0 : i32
    return %arg0, %c0_i32, %c0_i32_0 : i32, i32, i32
  }
}

</mosaic_0001>

<bundles_post_ra>
// kernel: tpu_custom_call.1
= control target key start
LH: loop header
LB: loop body
LE: loop exit
PB: predicated region body
PF: predicated region fallthrough
CT: control target
= control target key end

     0   :  { %7 = vsyncpa [#allocation3], 0  ;;  %s228_s0 = inlined_call_operand.hbm [shape: f32[8,128], index: 0, kind: input, shape index: {}]   ;;  %s229_s1 = inlined_call_operand.hbm [shape: f32[8,128], index: 1, kind: input, shape index: {}]   ;;  %s230_s2 = inlined_call_operand.hbm [shape: f32[1,1,128], index: 2, kind: output, shape index: {}]  }
   0x1   :  { %8 = vsyncpa [#allocation6], 0 }
   0x2   :  { %9 = vsyncpa [#allocation4], 0  ;;  %s174_s9 = smov [#allocation2]   ;;  %s175_s11 = smov [#allocation5]  }
   0x3   :  { %s16_s10 = sshll.u32 %s174_s9, 4  ;;  %s26_s12 = sshll.u32 %s175_s11, 4  ;;  %s17_s10 = int_to_ptr.vmem [resolvable:$true] %s16_s10  ;;  %s27_s12 = int_to_ptr.vmem [resolvable:$true] %s26_s12 }
   0x4   :  { %s102_s15 = scalar_lea.hbm %s228_s0, 128 }
   0x5   :  { %p103_p0 = scmp.ne.s32.totalorder %s228_s0, %s102_s15  ;;  %p106_p1 = scmp.lt.u32.totalorder %s102_s15, %s228_s0 }
   0x7   :  { %p108_p2 = pnand %p106_p1, %p103_p0 }
   0x9   :  { %111 = shalt.err (!%p108_p2)
}
   0xa   :  { %s112_s20 = scalar_lea.vmem %s17_s10, 128  ;;  %p117_p4 = scmp.lt.s32.totalorder %s17_s10, %s17_s10 }
   0xb   :  { %p113_p3 = scmp.ne.s32.totalorder %s17_s10, %s112_s20  ;;  %p118_p5 = scmp.lt.s32.totalorder %s112_s20, %s112_s20 }
   0xd   :  { %p119_p6 = por %p118_p5, %p117_p4 }
   0xf   :  { %p120_p7 = pnand %p119_p6, %p113_p3 }
  0x11   :  { %123 = shalt.err (!%p120_p7)
}
  0x12   :  { %19 = dma.hbm_to_vmem [thread:$0]  %s228_s0, 128, %s17_s10, [#allocation3]  }
  0x13   :  { %s124_s25 = scalar_lea.hbm %s229_s1, 128 }
  0x14   :  { %p125_p8 = scmp.ne.s32.totalorder %s229_s1, %s124_s25  ;;  %p128_p9 = scmp.lt.u32.totalorder %s124_s25, %s229_s1 }
  0x16   :  { %p130_p10 = pnand %p128_p9, %p125_p8 }
  0x18   :  { %133 = shalt.err (!%p130_p10)
}
  0x19   :  { %s134_s30 = scalar_lea.vmem %s27_s12, 128  ;;  %p139_p12 = scmp.lt.s32.totalorder %s27_s12, %s27_s12 }
  0x1a   :  { %p135_p11 = scmp.ne.s32.totalorder %s27_s12, %s134_s30  ;;  %p140_p13 = scmp.lt.s32.totalorder %s134_s30, %s134_s30 }
  0x1c   :  { %p141_p0 = por %p140_p13, %p139_p12 }
  0x1e   :  { %p142_p1 = pnand %p141_p0, %p135_p11 }
  0x20   :  { %145 = shalt.err (!%p142_p1)
}
  0x21   :  { %29 = dma.hbm_to_vmem [thread:$0]  %s229_s1, 128, %s27_s12, [#allocation6]  }
  0x22   :  { %168 = dma.done.wait [#allocation3], 128  }
  0x23   :  { %169 = vsyncadd [#allocation3], 4294967168 }
  0x24   :  { %170 = dma.done.wait [#allocation6], 128  }
  0x25   :  { %171 = vsyncadd [#allocation6], 4294967168  ;;  %v36_v0 = vld [vmem:[#allocation2] sm:$0xff]  ;;  %v37_v1 = vld [vmem:[#allocation5] sm:$0xff]  ;;  %s176_s1 = smov [#allocation7]  }
  0x26   :  { %38 = vmax.xlane.f32.xlu0 %v36_v0  ;;  %v48_v2 = vmul.f32 10.0, %v37_v1  ;;  %s79_s4 = sshll.u32 %s176_s1, 4  ;;  %s80_s4 = int_to_ptr.vmem [resolvable:$true] %s79_s4 }
  0x27   :  { %s146_s5 = scalar_lea.vmem %s80_s4, 16  ;;  %s150_s6 = scalar_lea.vmem %s80_s4, 32 }
  0x28   :  { %p147_p2 = scmp.ne.s32.totalorder %s80_s4, %s146_s5  ;;  %p151_p3 = scmp.lt.s32.totalorder %s80_s4, %s80_s4 }
  0x29   :  { %p152_p4 = scmp.lt.s32.totalorder %s150_s6, %s146_s5 }
  0x2a   :  { %49 = vmax.xlane.f32.xlu0 %v48_v2 }
  0x2b   :  { %p153_p5 = por %p152_p4, %p151_p3 }
  0x2d   :  { %p154_p6 = pnand %p153_p5, %p147_p2 }
  0xb3   :  { %v39_v3 = vpop.xlane.xlu0 %38 }
  0xb4   :  { %v40_v4 = vsub.f32 %v36_v0, %v39_v3 }
  0xb6   :  { %v41_v5 = vmul.f32 1.442695, %v40_v4 }
  0xb7   :  { %v50_v6 = vpop.xlane.xlu0 %49 }
  0xb8   :  { %v51_v7 = vsub.f32 %v48_v2, %v50_v6  ;;  %92 = vpow2.f32 %v41_v5 }
  0xba   :  { %v52_v8 = vmul.f32 1.442695, %v51_v7 }
  0xbc   :  { %94 = vpow2.f32 %v52_v8 }
  0xc2   :  { %v93_v9 = vpop.eup %92 }
  0xc3   :  { %43 = vadd.xlane.f32.xlu1 %v93_v9 }
  0xc6   :  { %v95_v10 = vpop.eup %94 }
  0xc7   :  { %54 = vadd.xlane.f32.xlu1 %v95_v10 }
 0x150   :  { %v44_v11 = vpop.xlane.xlu1 %43 }
 0x151   :  { %96 = vlog2.f32 %v44_v11 }
 0x154   :  { %v55_v12 = vpop.xlane.xlu1 %54 }
 0x155   :  { %98 = vlog2.f32 %v55_v12 }
 0x156   :  { %100 = vrcp.f32 %v55_v12 }
 0x15b   :  { %v97_v13 = vpop.eup %96 }
 0x15c   :  { %v46_v14 = vmul.f32 0.6931472, %v97_v13 }
 0x15e   :  { %v47_v18 = vsub.f32 %v40_v4, %v46_v14 }
 0x15f   :  { %v99_v15 = vpop.eup %98 }
 0x160   :  { %v101_v16 = vpop.eup %100  ;;  %v57_v17 = vmul.f32 0.6931472, %v99_v15 }
 0x161   :  { %v60_v20 = vmul.f32 %v101_v16, %v95_v10 }
 0x162   :  { %v61_v19 = vsub.f32 %v51_v7, %v57_v17 }
 0x163   :  { %vm62_vm0 = vcmp.gt.f32.partialorder %v60_v20, 0.0 }
 0x164   :  { %v63_v21 = vsub.f32 %v61_v19, %v47_v18 }
 0x166   :  { %v64_v22 = vmul.f32 %v63_v21, %v60_v20 }
 0x168   :  { %v65_v23 = vsel %vm62_vm0, %v64_v22, 0.0 }
 0x169   :  { %v66_v24 = vrot.slane %v65_v23, 4 }
 0x16b   :  { %v67_v25 = vadd.f32 %v66_v24, %v65_v23 }
 0x16d   :  { %v68_v26 = vrot.slane %v67_v25, 2 }
 0x16f   :  { %v69_v27 = vadd.f32 %v68_v26, %v67_v25 }
 0x171   :  { %v70_v28 = vrot.slane %v69_v27, 1 }
 0x173   :  { %v71_v29 = vadd.f32 %v70_v28, %v69_v27 }
 0x175   :  { %72 = vst [vmem:[#allocation7] sm:$0x1] %v71_v29 }
 0x176   :  { %157 = shalt.err (!%p154_p6)
}
 0x177   :  { %s158_s9 = scalar_lea.hbm %s230_s2, 16 }
 0x178   :  { %p159_p7 = scmp.ne.s32.totalorder %s230_s2, %s158_s9  ;;  %p162_p8 = scmp.lt.u32.totalorder %s158_s9, %s230_s2 }
 0x17a   :  { %p164_p9 = pnand %p162_p8, %p159_p7 }
 0x17c   :  { %167 = shalt.err (!%p164_p9)
}
 0x17d   :  { %82 = dma.vmem_to_hbm [thread:$0]  %s80_s4, 16, %s230_s2, [#allocation4]  }
 0x17e   :  { %172 = dma.done.wait [#allocation4], 16  }
 0x17f   :  { %173 = vsyncadd [#allocation4], 4294967280 }
 0x180   :  { %86 = vsyncpa [#allocation3], 1 }
 0x181   :  { %87 = vsyncpa [#allocation6], 1 }
 0x182   :  { %88 = vsyncpa [#allocation4], 1 }

</bundles_post_ra>
